<compile_context>
chip_gen: v7x
topology: tpu7x:2x2x1
jax: 0.10.0
libtpu: 0.0.40
codegen_flags: <defaults>
</compile_context>

<pallas_src>
import functools

import jax
import jax.numpy as jnp
from jax.experimental import pallas as pl
from jax.experimental.pallas import tpu as pltpu


def _cdiv(a: int, b: int) -> int:
    return (a + b - 1) // b


def _round_up(x: int, m: int) -> int:
    return _cdiv(x, m) * m


def residual_mlp_block_kernel(x_ref, w1_ref, b1_ref, w2_ref, b2_ref, o_ref):
    """Process one (TB, N) batch tile; weights/biases are resident across tiles."""
    x = x_ref[...]                                   # (TB, N) f32
    h = jnp.maximum(x, 0.0)                          # ReLU   (Dropout p=0.0 -> identity)
    # bf16 operands feed the MXU natively; accumulate in f32.
    h = jnp.dot(h.astype(jnp.bfloat16), w1_ref[...],
                preferred_element_type=jnp.float32) + b1_ref[...]   # Linear 1
    h = jnp.maximum(h, 0.0)                          # ReLU
    h = jnp.dot(h.astype(jnp.bfloat16), w2_ref[...],
                preferred_element_type=jnp.float32) + b2_ref[...]   # Linear 2
    o_ref[...] = (h + x).astype(o_ref.dtype)         # residual add


def prepare_params(w1, b1, w2, b2):
    """One-time (load-time) parameter prep, hoisted out of the per-call forward:
    bf16 weights for the MXU, biases reshaped to (1, N) f32 rows."""
    return (jnp.asarray(w1, jnp.bfloat16),
            jnp.asarray(b1, jnp.float32).reshape(1, -1),
            jnp.asarray(w2, jnp.bfloat16),
            jnp.asarray(b2, jnp.float32).reshape(1, -1))


@functools.partial(jax.jit, static_argnames=("block_batch",))
def residual_mlp_block(x, w1, b1, w2, b2, *, block_batch=512):
    """x: (B, N) f32; w1, w2: (N, N) bf16 stored [in, out]; b1, b2: (1, N) f32.

    Pass parameters through prepare_params() once (bf16 cast / bias reshape are not
    paid per forward call).
    """
    B, N = x.shape
    assert w1.shape == (N, N) and w2.shape == (N, N)
    assert b1.shape == (1, N) and b2.shape == (1, N)

    # --- Batch tiling: pad batch only to a multiple of 8 (plus at most a handful of
    # rows so the tile count divides it), and keep >=2 tiles when possible so both
    # v7x TensorCores get work.
    Bp8 = _round_up(B, 8)
    num_tiles = _cdiv(Bp8, block_batch)
    if Bp8 >= 16:
        num_tiles = max(num_tiles, 2)
    TB = _round_up(_cdiv(Bp8, num_tiles), 8)   # tile rows, always a multiple of 8
    Bp = TB * num_tiles

    # Pad batch only when strictly necessary (padded rows are sliced off afterwards).
    xp = x if Bp == B else jnp.zeros((Bp, N), x.dtype).at[:B].set(x)

    # --- Grid-invariant weights: single-buffer when big enough to matter for VMEM
    # (v7x has 64 MiB physical / 32 MiB scoped default).
    weights_bytes_each = N * N * 2                     # bf16
    single_buffer_weights = (2 * weights_bytes_each) >= (8 << 20)
    if single_buffer_weights:
        w_spec = pl.BlockSpec((N, N), lambda i: (0, 0),
                              pipeline_mode=pl.Buffered(1))
        w_bufs = 1
    else:
        w_spec = pl.BlockSpec((N, N), lambda i: (0, 0))
        w_bufs = 2

    # Raise the scoped VMEM limit only if our estimated footprint needs it.
    vmem_est = (w_bufs * 2 * weights_bytes_each        # W1 + W2
                + 2 * 2 * N * 4                        # biases, double-buffered
                + 2 * 2 * TB * N * 4)                  # x + out, double-buffered f32
    vmem_limit = None
    if vmem_est > (24 << 20):
        vmem_limit = min(int(vmem_est * 1.25) + (2 << 20), 128 << 20)

    cost = pl.CostEstimate(
        flops=4 * Bp * N * N,                          # two matmuls
        transcendentals=0,
        bytes_accessed=2 * Bp * N * 4                  # x read + out write (f32)
                       + 2 * weights_bytes_each        # W1 + W2 (bf16)
                       + 2 * N * 4)                    # biases

    out = pl.pallas_call(
        residual_mlp_block_kernel,
        out_shape=jax.ShapeDtypeStruct((Bp, N), x.dtype),
        grid=(num_tiles,),
        in_specs=[
            pl.BlockSpec((TB, N), lambda i: (i, 0)),   # x: tiled over batch
            w_spec,                                    # W1: resident in VMEM
            pl.BlockSpec((1, N), lambda i: (0, 0)),    # b1: resident
            w_spec,                                    # W2: resident
            pl.BlockSpec((1, N), lambda i: (0, 0)),    # b2: resident
        ],
        out_specs=pl.BlockSpec((TB, N), lambda i: (i, 0)),
        compiler_params=pltpu.CompilerParams(
            dimension_semantics=("parallel",),         # megacore sharding on v7x
            vmem_limit_bytes=vmem_limit),
        cost_estimate=cost,
    )(xp, w1, b1, w2, b2)

    return out if Bp == B else out[:B]


def init_linear_params(key, in_features, out_features):
    """Deterministic init mimicking torch.nn.Linear default (uniform +-1/sqrt(in))."""
    kw, kb = jax.random.split(key)
    bound = 1.0 / jnp.sqrt(float(in_features))
    # Stored directly as [in, out] (i.e. torch weight transposed).
    w = jax.random.uniform(kw, (in_features, out_features),
                           minval=-bound, maxval=bound, dtype=jnp.float32)
    b = jax.random.uniform(kb, (out_features,),
                           minval=-bound, maxval=bound, dtype=jnp.float32)
    return w, b


def reference(x, w1, b1, w2, b2):
    h = jnp.maximum(x, 0.0)
    h = h @ w1 + b1
    h = jnp.maximum(h, 0.0)
    h = h @ w2 + b2
    return h + x


if __name__ == "__main__":
    num_neurons = 100   # module default; feature axis is kept at its native width

    key = jax.random.PRNGKey(0)
    kx, k1, k2, kx2 = jax.random.split(key, 4)

    w1, b1 = init_linear_params(k1, num_neurons, num_neurons)
    w2, b2 = init_linear_params(k2, num_neurons, num_neurons)
    params = prepare_params(w1, b1, w2, b2)   # one-time bf16 cast / bias reshape

    # Small shape: single batch tile, feature width 100 (masked lane stores).
    x = jax.random.normal(kx, (8, num_neurons), dtype=jnp.float32)
    out = jax.block_until_ready(residual_mlp_block(x, *params))
    ref = reference(x, w1, b1, w2, b2)
    assert out.shape == x.shape
    # bf16 MXU operands with f32 accumulation -> loose tolerance vs f32 reference.
    assert jnp.allclose(out, ref, atol=5e-2, rtol=5e-2), "mismatch vs reference (small)"

    # Larger batch: B=272 now runs as 2 tiles of 136 rows with no batch padding.
    x2 = jax.random.normal(kx2, (272, num_neurons), dtype=jnp.float32)
    out2 = jax.block_until_ready(residual_mlp_block(x2, *params))
    ref2 = reference(x2, w1, b1, w2, b2)
    assert out2.shape == x2.shape
    assert jnp.allclose(out2, ref2, atol=5e-2, rtol=5e-2), "mismatch vs reference (tiled)"

    print("KERNEL_OK")
</pallas_src>

<mosaic_0001>
module attributes {stable_mosaic.version = 11 : i64} {
  func.func @residual_mlp_block_kernel(%arg0: i32, %arg1: memref<8x100xf32, #tpu.memory_space<vmem>>, %arg2: memref<100x100xbf16, #tpu.memory_space<vmem>>, %arg3: memref<1x100xf32, #tpu.memory_space<vmem>>, %arg4: memref<100x100xbf16, #tpu.memory_space<vmem>>, %arg5: memref<1x100xf32, #tpu.memory_space<vmem>>, %arg6: memref<8x100xf32, #tpu.memory_space<vmem>>) attributes {dimension_semantics = [#tpu.dimension_semantics<parallel>], iteration_bounds = array<i64: 1>, scalar_prefetch = 0 : i64, scratch_operands = 0 : i64, tpu.core_type = #tpu.core_type<tc>, window_params = [{transform_indices = @transform_0, window_bounds = array<i64: 8, 100>}, {pipeline_mode = #tpu.pipeline_mode<synchronous>, transform_indices = @transform_1, window_bounds = array<i64: 100, 100>}, {pipeline_mode = #tpu.pipeline_mode<synchronous>, transform_indices = @transform_2, window_bounds = array<i64: 1, 100>}, {pipeline_mode = #tpu.pipeline_mode<synchronous>, transform_indices = @transform_3, window_bounds = array<i64: 100, 100>}, {pipeline_mode = #tpu.pipeline_mode<synchronous>, transform_indices = @transform_4, window_bounds = array<i64: 1, 100>}, {transform_indices = @transform_5, window_bounds = array<i64: 8, 100>}]} {
    %c0 = arith.constant 0 : index
    %c0_0 = arith.constant 0 : index
    %0 = vector.load %arg1[%c0, %c0_0] : memref<8x100xf32, #tpu.memory_space<vmem>>, vector<8x100xf32>
    %cst = arith.constant 0.000000e+00 : f32
    %1 = vector.broadcast %cst : f32 to vector<8x100xf32>
    %2 = arith.maximumf %0, %1 : vector<8x100xf32>
    %3 = arith.truncf %2 : vector<8x100xf32> to vector<8x100xbf16>
    %c0_1 = arith.constant 0 : index
    %c0_2 = arith.constant 0 : index
    %4 = vector.load %arg2[%c0_1, %c0_2] : memref<100x100xbf16, #tpu.memory_space<vmem>>, vector<100x100xbf16>
    %cst_3 = arith.constant dense<0.000000e+00> : vector<8x100xf32>
    %5 = tpu.matmul %3, %4, %cst_3 {dimension_numbers = #tpu.dot_dimension_numbers<[1], [0], [0], [1], [0, 0, 1, 1], [], []>} : vector<8x100xbf16>, vector<100x100xbf16>, vector<8x100xf32> -> vector<8x100xf32>
    %c0_4 = arith.constant 0 : index
    %c0_5 = arith.constant 0 : index
    %6 = vector.load %arg3[%c0_4, %c0_5] : memref<1x100xf32, #tpu.memory_space<vmem>>, vector<1x100xf32>
    %7 = vector.broadcast %6 : vector<1x100xf32> to vector<8x100xf32>
    %8 = arith.addf %5, %7 : vector<8x100xf32>
    %cst_6 = arith.constant 0.000000e+00 : f32
    %9 = vector.broadcast %cst_6 : f32 to vector<8x100xf32>
    %10 = arith.maximumf %8, %9 : vector<8x100xf32>
    %11 = arith.truncf %10 : vector<8x100xf32> to vector<8x100xbf16>
    %c0_7 = arith.constant 0 : index
    %c0_8 = arith.constant 0 : index
    %12 = vector.load %arg4[%c0_7, %c0_8] : memref<100x100xbf16, #tpu.memory_space<vmem>>, vector<100x100xbf16>
    %cst_9 = arith.constant dense<0.000000e+00> : vector<8x100xf32>
    %13 = tpu.matmul %11, %12, %cst_9 {dimension_numbers = #tpu.dot_dimension_numbers<[1], [0], [0], [1], [0, 0, 1, 1], [], []>} : vector<8x100xbf16>, vector<100x100xbf16>, vector<8x100xf32> -> vector<8x100xf32>
    %c0_10 = arith.constant 0 : index
    %c0_11 = arith.constant 0 : index
    %14 = vector.load %arg5[%c0_10, %c0_11] : memref<1x100xf32, #tpu.memory_space<vmem>>, vector<1x100xf32>
    %15 = vector.broadcast %14 : vector<1x100xf32> to vector<8x100xf32>
    %16 = arith.addf %13, %15 : vector<8x100xf32>
    %17 = arith.addf %16, %0 : vector<8x100xf32>
    %c0_12 = arith.constant 0 : index
    %c0_13 = arith.constant 0 : index
    %18 = vector.load %arg6[%c0_12, %c0_13] : memref<8x100xf32, #tpu.memory_space<vmem>>, vector<8x100xf32>
    tpu.vector_store %arg6[%c0_12, %c0_13], %17 {strides = array<i32>} : memref<8x100xf32, #tpu.memory_space<vmem>>, vector<8x100xf32>,
    return
  }
  func.func @transform_0(%arg0: i32) -> (i32, i32) {
    %c0_i32 = arith.constant 0 : i32
    %c0_i32_0 = arith.constant 0 : i32
    return %arg0, %c0_i32 : i32, i32
  }
  func.func @transform_1(%arg0: i32) -> (i32, i32) {
    %c0_i32 = arith.constant 0 : i32
    %c0_i32_0 = arith.constant 0 : i32
    %c0_i32_1 = arith.constant 0 : i32
    return %c0_i32, %c0_i32_0 : i32, i32
  }
  func.func @transform_2(%arg0: i32) -> (i32, i32) {
    %c0_i32 = arith.constant 0 : i32
    %c0_i32_0 = arith.constant 0 : i32
    %c0_i32_1 = arith.constant 0 : i32
    return %c0_i32, %c0_i32_0 : i32, i32
  }
  func.func @transform_3(%arg0: i32) -> (i32, i32) {
    %c0_i32 = arith.constant 0 : i32
    %c0_i32_0 = arith.constant 0 : i32
    %c0_i32_1 = arith.constant 0 : i32
    return %c0_i32, %c0_i32_0 : i32, i32
  }
  func.func @transform_4(%arg0: i32) -> (i32, i32) {
    %c0_i32 = arith.constant 0 : i32
    %c0_i32_0 = arith.constant 0 : i32
    %c0_i32_1 = arith.constant 0 : i32
    return %c0_i32, %c0_i32_0 : i32, i32
  }
  func.func @transform_5(%arg0: i32) -> (i32, i32) {
    %c0_i32 = arith.constant 0 : i32
    %c0_i32_0 = arith.constant 0 : i32
    return %arg0, %c0_i32 : i32, i32
  }
}

</mosaic_0001>

<bundles_post_ra>
// kernel: residual_mlp_block.1
= control target key start
LH: loop header
LB: loop body
LE: loop exit
PB: predicated region body
PF: predicated region fallthrough
CT: control target
= control target key end

     0   :  { %10 = vsyncpa [#allocation3], 0  ;;  %s585_s0 = inlined_call_operand.hbm [shape: f32[8,100], index: 0, kind: input, shape index: {}]   ;;  %s586_s1 = inlined_call_operand.hbm [shape: bf16[100,100], index: 1, kind: input, shape index: {}]   ;;  %s587_s2 = inlined_call_operand.vmem [shape: f32[1,100], index: 2, kind: input, shape index: {}]   ;;  %s588_s3 = inlined_call_operand.hbm [shape: bf16[100,100], index: 3, kind: input, shape index: {}]   ;;  %s589_s4 = inlined_call_operand.vmem [shape: f32[1,100], index: 4, kind: input, shape index: {}]   ;;  %s590_s5 = inlined_call_operand.hbm [shape: f32[8,100], index: 5, kind: output, shape index: {}]  }
   0x1   :  { %11 = vsyncpa [#allocation6], 0 }
   0x2   :  { %12 = vsyncpa [#allocation4], 0  ;;  %s482_s18 = smov [#allocation5]   ;;  %s388_s22 = scalar_lea.hbm %s586_s1, 832 }
   0x3   :  { %s28_s19 = sshll.u32 %s482_s18, 4  ;;  %p389_p0 = scmp.ne.s32.totalorder %s586_s1, %s388_s22  ;;  %s29_s19 = int_to_ptr.vmem [resolvable:$true] %s28_s19 }
   0x4   :  { %p392_p1 = scmp.lt.u32.totalorder %s388_s22, %s586_s1 }
   0x6   :  { %p394_p2 = pnand %p392_p1, %p389_p0 }
   0x8   :  { %397 = shalt.err (!%p394_p2)
}
   0x9   :  { %s398_s27 = scalar_lea.vmem %s29_s19, 832  ;;  %p403_p4 = scmp.lt.s32.totalorder %s29_s19, %s29_s19 }
   0xa   :  { %p399_p3 = scmp.ne.s32.totalorder %s29_s19, %s398_s27  ;;  %p404_p5 = scmp.lt.s32.totalorder %s398_s27, %s398_s27 }
   0xc   :  { %p405_p6 = por %p404_p5, %p403_p4 }
   0xe   :  { %p406_p7 = pnand %p405_p6, %p399_p3 }
  0x10   :  { %409 = shalt.err (!%p406_p7)
}
  0x11   :  { %s483_s28 = smov 64   ;;  %s484_s29 = smov 4  }
  0x12   :  { %34 = dma.hbm_to_vmem [thread:$0]  %s586_s1, 832, %s29_s19, [#allocation6], %s483_s28, %s483_s28, %s484_s29  }
  0x13   :  { %s485_s7 = smov [#allocation2]   ;;  %s486_s9 = smov [#allocation7]  }
  0x14   :  { %s19_s8 = sshll.u32 %s485_s7, 4  ;;  %s42_s10 = sshll.u32 %s486_s9, 4  ;;  %s20_s8 = int_to_ptr.vmem [resolvable:$true] %s19_s8  ;;  %s43_s10 = int_to_ptr.vmem [resolvable:$true] %s42_s10 }
  0x15   :  { %s410_s13 = scalar_lea.hbm %s585_s0, 128 }
  0x16   :  { %p411_p8 = scmp.ne.s32.totalorder %s585_s0, %s410_s13  ;;  %p414_p9 = scmp.lt.u32.totalorder %s410_s13, %s585_s0 }
  0x18   :  { %p416_p10 = pnand %p414_p9, %p411_p8 }
  0x1a   :  { %419 = shalt.err (!%p416_p10)
}
  0x1b   :  { %s420_s1 = scalar_lea.vmem %s20_s8, 128  ;;  %p425_p12 = scmp.lt.s32.totalorder %s20_s8, %s20_s8 }
  0x1c   :  { %p421_p11 = scmp.ne.s32.totalorder %s20_s8, %s420_s1  ;;  %p426_p13 = scmp.lt.s32.totalorder %s420_s1, %s420_s1 }
  0x1e   :  { %p427_p0 = por %p426_p13, %p425_p12 }
  0x20   :  { %p428_p1 = pnand %p427_p0, %p421_p11 }
  0x22   :  { %431 = shalt.err (!%p428_p1)
}
  0x23   :  { %22 = dma.hbm_to_vmem [thread:$0]  %s585_s0, 128, %s20_s8, [#allocation3]  }
  0x24   :  { %s432_s22 = scalar_lea.hbm %s588_s3, 832 }
  0x25   :  { %p433_p2 = scmp.ne.s32.totalorder %s588_s3, %s432_s22  ;;  %p436_p3 = scmp.lt.u32.totalorder %s432_s22, %s588_s3 }
  0x27   :  { %p438_p4 = pnand %p436_p3, %p433_p2 }
  0x29   :  { %441 = shalt.err (!%p438_p4)
}
  0x2a   :  { %s442_s27 = scalar_lea.vmem %s43_s10, 832  ;;  %p447_p6 = scmp.lt.s32.totalorder %s43_s10, %s43_s10 }
  0x2b   :  { %p443_p5 = scmp.ne.s32.totalorder %s43_s10, %s442_s27  ;;  %p448_p7 = scmp.lt.s32.totalorder %s442_s27, %s442_s27 }
  0x2d   :  { %p449_p8 = por %p448_p7, %p447_p6 }
  0x2f   :  { %p450_p9 = pnand %p449_p8, %p443_p5 }
  0x31   :  { %453 = shalt.err (!%p450_p9)
}
  0x32   :  { %48 = dma.hbm_to_vmem [thread:$0]  %s588_s3, 832, %s43_s10, [#allocation6], %s483_s28, %s483_s28, %s484_s29  }
  0x33   :  { %476 = dma.done.wait [#allocation3], 128  }
  0x34   :  { %477 = vsyncadd [#allocation3], 4294967168 }
  0x35   :  { %478 = dma.done.wait [#allocation6], 1664  }
  0x36   :  { %479 = vsyncadd [#allocation6], 4294965632  ;;  %v487_v0 = vmov 0.0   ;;  %vm488_vm0 = vmmov 0   ;;  %v374_v1 = vld [vmem:[#allocation5] sm:$0xff]   ;;  %v375_v2 = vld [vmem:[#allocation5 + $0x8] sm:$0xff]  }
  0x37   :  { %330 = vmatprep.subr.bf16.mxu0 %v487_v0  ;;  %344 = vmatprep.mubr.msk.bf16.mxu0 %vm488_vm0, %v487_v0  ;;  %v376_v3 = vld [vmem:[#allocation5 + $0x10] sm:$0xff]   ;;  %v382_v5 = vld [vmem:[#allocation7 + $0x8] sm:$0xff]   ;;  %v383_v7 = vld [vmem:[#allocation7 + $0x10] sm:$0xff]   ;;  %vm127_vm1 = vcmask 1041408   ;;  %vm123_vm2 = vcmask 818176   ;;  %s489_s7 = smov [#allocation8]  }
  0x38   :  { %348 = vmatprep.subr.bf16.mxu1 %v487_v0  ;;  %362 = vmatprep.mubr.msk.bf16.mxu1 %vm488_vm0, %v487_v0  ;;  %v381_v4 = vld [vmem:[#allocation7] sm:$0xff]   ;;  %v378_v8 = vld [vmem:[#allocation5 + $0x20] sm:$0xff]   ;;  %v384_v9 = vld [vmem:[#allocation7 + $0x18] sm:$0xff]   ;;  %s286_s8 = sshll.u32 %s489_s7, 4  ;;  %s287_s8 = int_to_ptr.vmem [resolvable:$true] %s286_s8 }
  0x39   :  { %331 = vmatpush3.bf16.msra.mxu0 %v374_v1  ;;  %349 = vmatpush3.bf16.msra.mxu1 %v381_v4  ;;  %v377_v6 = vld [vmem:[#allocation5 + $0x18] sm:$0xff]   ;;  %v379_v10 = vld [vmem:[#allocation5 + $0x28] sm:$0xff]   ;;  %v380_v12 = vld [vmem:[#allocation5 + $0x30] ss:$0 sps:$4 sm:$0x33]   ;;  %p459_p11 = scmp.lt.s32.totalorder %s287_s8, %s287_s8 }
  0x3a   :  { %332 = vmatprep.subr.bf16.mxu0 %v487_v0  ;;  %350 = vmatprep.subr.bf16.mxu1 %v487_v0  ;;  %v61_v11 = vld [vmem:[#allocation2] sm:$0xff]  ;;  %v129_v15 = vsel %vm127_vm1, %v380_v12, 0  ;;  %v387_v18 = vld [vmem:[#allocation7 + $0x30] ss:$0 sps:$4 sm:$0x33]  }
  0x3b   :  { %v62_v13 = vmax.f32 %v61_v11, 0.0  ;;  %v385_v14 = vld [vmem:[#allocation7 + $0x20] sm:$0xff]   ;;  %v386_v17 = vld [vmem:[#allocation7 + $0x28] sm:$0xff]   ;;  %v236_v19 = vsel %vm127_vm1, %v387_v18, 0 }
  0x3c   :  { %v296_v20 = vld [vmem:[%s587_s2] ss:$0 sm:$0xff]  ;;  %s454_s2 = scalar_lea.vmem %s287_s8, 128 }
  0x3d   :  { %333 = vmatpush3.bf16.msra.mxu0 %v375_v2  ;;  %351 = vmatpush3.bf16.msra.mxu1 %v382_v5  ;;  %v63_v16 = vpack.c.bf16 %v62_v13, %v62_v13  ;;  %v305_v28 = vld [vmem:[%s589_s4] ss:$0 sm:$0xff]  ;;  %p455_p10 = scmp.ne.s32.totalorder %s287_s8, %s454_s2  ;;  %p460_p12 = scmp.lt.s32.totalorder %s454_s2, %s454_s2 }
  0x3e   :  { %334 = vmatprep.subr.bf16.mxu0 %v487_v0  ;;  %352 = vmatprep.subr.bf16.mxu1 %v487_v0 }
  0x3f   :  { %p461_p13 = por %p460_p12, %p459_p11 }
  0x41   :  { %335 = vmatpush3.bf16.msra.mxu0 %v376_v3  ;;  %353 = vmatpush3.bf16.msra.mxu1 %v383_v7  ;;  %p462_p0 = pnand %p461_p13, %p455_p10 }
  0x42   :  { %336 = vmatprep.subr.bf16.mxu0 %v487_v0  ;;  %354 = vmatprep.subr.bf16.mxu1 %v487_v0 }
  0x45   :  { %337 = vmatpush3.bf16.msra.mxu0 %v377_v6  ;;  %355 = vmatpush3.bf16.msra.mxu1 %v384_v9 }
  0x46   :  { %338 = vmatprep.subr.bf16.mxu0 %v487_v0  ;;  %356 = vmatprep.subr.bf16.mxu1 %v487_v0 }
  0x49   :  { %339 = vmatpush3.bf16.msra.mxu0 %v378_v8  ;;  %357 = vmatpush3.bf16.msra.mxu1 %v385_v14 }
  0x4a   :  { %340 = vmatprep.subr.bf16.mxu0 %v487_v0  ;;  %358 = vmatprep.subr.bf16.mxu1 %v487_v0 }
  0x4d   :  { %341 = vmatpush3.bf16.msra.mxu0 %v379_v10  ;;  %359 = vmatpush3.bf16.msra.mxu1 %v386_v17 }
  0x4e   :  { %342 = vmatprep.subr.bf16.mxu0 %v487_v0  ;;  %360 = vmatprep.subr.bf16.mxu1 %v487_v0 }
  0x51   :  { %343 = vmatpush3.bf16.msra.mxu0 %v129_v15  ;;  %361 = vmatpush3.bf16.msra.mxu1 %v236_v19 }
  0x54   :  { %345 = vmatmul.mubr.msk.bf16.vlgmr.msra.gmra.mrb[0].mxu0 %vm123_vm2, %v63_v16 }
 0x127   :  { %v165_v21 = vpop.f32.mrb[0].mxu0 }
 0x128   :  { %v166_v22 = vadd.f32 %v296_v20, %v165_v21  ;;  %v346_v23 = vpop.f32.mrb[1].mxu0 }
 0x129   :  { %v168_v24 = vpop.f32.mrb[2].mxu0 }
 0x12a   :  { %v171_v25 = vmax.f32 %v166_v22, 0.0  ;;  %v347_v26 = vpop.f32.mrb[3].mxu0 }
 0x12c   :  { %v172_v27 = vpack.c.bf16 %v171_v25, %v171_v25 }
 0x12e   :  { %363 = vmatmul.mubr.msk.bf16.vlgmr.msra.gmra.mrb[0].mxu1 %vm123_vm2, %v172_v27 }
 0x201   :  { %v272_v29 = vpop.f32.mrb[0].mxu1 }
 0x202   :  { %v273_v30 = vadd.f32 %v305_v28, %v272_v29  ;;  %v364_v31 = vpop.f32.mrb[1].mxu1 }
 0x203   :  { %v275_v32 = vpop.f32.mrb[2].mxu1 }
 0x204   :  { %v278_v33 = vadd.f32 %v273_v30, %v61_v11  ;;  %v365_v34 = vpop.f32.mrb[3].mxu1 }
 0x206   :  { %279 = vst.msk [vmem:[#allocation8] sm:$0xff] %vm123_vm2, %v278_v33 }
 0x207   :  { %465 = shalt.err (!%p462_p0)
}
 0x208   :  { %s466_s10 = scalar_lea.hbm %s590_s5, 128 }
 0x209   :  { %p467_p1 = scmp.ne.s32.totalorder %s590_s5, %s466_s10  ;;  %p470_p2 = scmp.lt.u32.totalorder %s466_s10, %s590_s5 }
 0x20b   :  { %p472_p3 = pnand %p470_p2, %p467_p1 }
 0x20d   :  { %475 = shalt.err (!%p472_p3)
}
 0x20e   :  { %289 = dma.vmem_to_hbm [thread:$0]  %s287_s8, 128, %s590_s5, [#allocation4]  }
 0x20f   :  { %480 = dma.done.wait [#allocation4], 128  }
 0x210   :  { %481 = vsyncadd [#allocation4], 4294967168 }
 0x211   :  { %293 = vsyncpa [#allocation3], 1 }
 0x212   :  { %294 = vsyncpa [#allocation6], 1 }
 0x213   :  { %295 = vsyncpa [#allocation4], 1 }

</bundles_post_ra>
